<compile_context>
chip_gen: v5e
topology: v5e:2x2
jax: 0.10.0
libtpu: 0.0.40
codegen_flags: <defaults>
</compile_context>

<pallas_src>
import functools

import numpy as np

import jax
import jax.numpy as jnp
from jax.experimental import pallas as pl
from jax.experimental.pallas import tpu as pltpu


_PAD = 128   # zero halo around/between images, in lanes: a multiple of 128 (lane-tile
             # aligned) and >= W, so +-W row shifts never leak into a neighbouring image.


def _pad8(c):
    """Round a channel count up to a sublane multiple (8 f32 rows per vreg)."""
    return -(-c // 8) * 8


def _conv3x3(src, w3, mask_l, mask_r, lp, w_img, mxu_dtype):
    """3x3 'same' conv over a zero-halo flat (C_in_p, Lp) image slab.

    One im2col matmul per conv: kx taps stacked on the contraction (sublane) axis
    (K = 3*C_in_p); the 3 ky contributions return as output-row blocks that are
    combined with two +-W lane rolls.  4 XLU rolls per conv total.
    """
    cout_p = w3.shape[0] // 3
    x3 = jnp.concatenate(
        [pltpu.roll(src * mask_l, 1, axis=1),        # kx=0 tap reads column c-1
         src,                                        # kx=1 tap reads column c
         pltpu.roll(src * mask_r, lp - 1, axis=1)],  # kx=2 tap reads column c+1
        axis=0)                                      # (3*C_in_p, Lp), 8-row aligned
    if mxu_dtype is not None:
        x3 = x3.astype(mxu_dtype)                    # one operand cast per conv
    y3 = jax.lax.dot_general(                        # single MXU matmul, f32 accumulate
        w3, x3, dimension_numbers=(((1,), (0,)), ((), ())),
        preferred_element_type=jnp.float32)          # (3*C_out_p, Lp)
    # ky row-conv blocks shifted by one image row (+-W lanes) and summed.
    return (pltpu.roll(y3[0:cout_p], w_img, axis=1)
            + y3[cout_p:2 * cout_p]
            + pltpu.roll(y3[2 * cout_p:3 * cout_p], lp - w_img, axis=1))


def _resnet_block_kernel(x_ref, w0_ref, b0_ref, w1_ref, b1_ref, m_ref, o_ref, *,
                         nb, hw, w_img, lp, c_res, res_scale, mxu_dtype):
    """Fused conv0 + bias + ReLU -> conv1 + bias -> residual, `nb` images per step."""
    cin_p = x_ref.shape[1]
    mask_l = m_ref[0:1, :]     # 0 where a kx=0 tap would read across the left image edge
    mask_r = m_ref[1:2, :]     # 0 where a kx=2 tap would read across the right image edge
    rowm = m_ref[2:3, :]       # 1 on image lanes, 0 on the zero-halo lanes

    imgs = [x_ref[i].astype(jnp.float32) for i in range(nb)]   # (Cin_p, HW) each

    # Zero-halo flat layout: [pad | img0 | pad | img1 | ... | pad]; every piece is a
    # multiple of 128 lanes, so the concat and the interior slices are tile-granular.
    zpad = jnp.zeros((cin_p, _PAD), jnp.float32)
    parts = [zpad]
    for i in range(nb):
        parts.append(imgs[i])
        parts.append(zpad)
    xp = jnp.concatenate(parts, axis=1)              # (Cin_p, Lp)

    # conv0 + bias + ReLU; re-zero the halo lanes so it is a valid conv1 input.
    h = jnp.maximum(
        _conv3x3(xp, w0_ref[...], mask_l, mask_r, lp, w_img, mxu_dtype) + b0_ref[...],
        0.0) * rowm                                  # (Cmid_p, Lp), never leaves VMEM

    # conv1 + bias on the tile-aligned interior slices, residual add, per-image store.
    acc1 = _conv3x3(h, w1_ref[...], mask_l, mask_r, lp, w_img, mxu_dtype)
    for i in range(nb):
        start = _PAD + i * (hw + _PAD)               # multiple of 128 -> aligned slice
        y = acc1[0:c_res, start:start + hw] + b1_ref[...]
        y = imgs[i][0:c_res] + jnp.float32(res_scale) * y
        o_ref[i] = y.astype(o_ref.dtype)             # lane-dense (C, HW) store


def _pick_images_per_step(n, requested):
    if requested is not None:
        assert n % requested == 0, "images_per_step must divide the batch size"
        return requested
    # Pack several images into one grid step (per-step overhead dominates at small
    # shapes) but keep >= 2 grid steps when possible so megacore (v7x) has work.
    best = 1
    for d in range(1, min(n, 8) + 1):
        if n % d == 0 and n // d >= 2:
            best = d
    return best


def _pack_conv_weights(w, cin_p, cout_p, mxu_dtype):
    """OIHW (Cout, Cin, 3, 3) -> (3*Cout_p, 3*Cin_p).

    Row block = ky, column block = kx; channels zero-padded to sublane multiples.
    Cast to the MXU dtype once here (grid-invariant -> no in-kernel weight casts).
    """
    cout, cin = w.shape[0], w.shape[1]
    wp = jnp.zeros((3, cout_p, 3, cin_p), jnp.float32)
    wp = wp.at[:, :cout, :, :cin].set(
        jnp.transpose(w.astype(jnp.float32), (2, 0, 3, 1)))
    wp = wp.reshape(3 * cout_p, 3 * cin_p)
    return wp if mxu_dtype is None else wp.astype(mxu_dtype)


def resnet_block_forward(x_nchw, params, res_scale=1.0, mxu_dtype=jnp.bfloat16,
                         images_per_step=None):
    """ResNetBlock forward. x is NCHW; weights are PyTorch OIHW; biases 1-D.

    mxu_dtype: dtype of the matmul operands only (accumulation, bias, ReLU, masks
    and residual stay f32).  bfloat16 is the fast MXU path on v5e/v6e/v7x; pass
    None for the exact f32 path.
    """
    w0, b0, w1, b1 = params
    n, cin, h_img, w_img = x_nchw.shape
    cmid, cout = w0.shape[0], w1.shape[0]
    assert w0.shape == (cmid, cin, 3, 3) and w1.shape == (cout, cmid, 3, 3)
    assert cout == cin, "residual add requires in_nc == out_nc"
    assert w_img <= _PAD, "image width must be <= 128 for this flat-lane layout"
    # TODO(synk): for large feature maps / C >= 128 switch to a row-tiled NHWC variant
    # with a 2-row halo, with tiles sized for v7x's 64 MiB VMEM (not v6e's 128 MiB).

    hw = h_img * w_img
    nb = _pick_images_per_step(n, images_per_step)
    grid = (n // nb,)
    lp = _PAD + nb * (hw + _PAD)                      # flat lanes per grid step

    cin_p, cmid_p, cout_p = _pad8(cin), _pad8(cmid), _pad8(cout)

    # Channel-pad activations to a sublane multiple (full vregs, aligned sublane concat).
    x_flat = x_nchw.reshape(n, cin, hw)
    if cin_p != cin:
        x_flat = jnp.pad(x_flat, ((0, 0), (0, cin_p - cin), (0, 0)))

    # Weights packed (and bf16-cast) once in the wrapper; biases stay f32.
    w0_p = _pack_conv_weights(w0, cin_p, cmid_p, mxu_dtype)     # (3*Cmid_p, 3*Cin_p)
    w1_p = _pack_conv_weights(w1, cmid_p, cout_p, mxu_dtype)    # (3*Cout_p, 3*Cmid_p)
    b0_p = jnp.zeros((cmid_p, 1), jnp.float32).at[:cmid, 0].set(b0.astype(jnp.float32))
    b1_c = b1.reshape(cout, 1).astype(jnp.float32)

    # Grid-invariant halo masks over the padded flat layout (source coordinates).
    col = np.full((lp,), -1, np.int32)
    interior = np.zeros((lp,), np.float32)
    cidx = np.arange(hw, dtype=np.int32) % w_img
    for i in range(nb):
        s = _PAD + i * (hw + _PAD)
        col[s:s + hw] = cidx
        interior[s:s + hw] = 1.0
    masks = jnp.asarray(np.stack([(col != w_img - 1).astype(np.float32),
                                  (col != 0).astype(np.float32),
                                  interior], axis=0))            # (3, Lp)

    kernel = functools.partial(
        _resnet_block_kernel, nb=nb, hw=hw, w_img=w_img, lp=lp, c_res=cout,
        res_scale=float(res_scale), mxu_dtype=mxu_dtype)

    y_flat = pl.pallas_call(
        kernel,
        out_shape=jax.ShapeDtypeStruct((n, cout, hw), x_nchw.dtype),
        grid=grid,
        in_specs=[
            pl.BlockSpec((nb, cin_p, hw), lambda g: (g, 0, 0)),     # nb images per step
            pl.BlockSpec(w0_p.shape, lambda g: (0, 0)),             # conv0 weights (invariant)
            pl.BlockSpec(b0_p.shape, lambda g: (0, 0)),             # conv0 bias
            pl.BlockSpec(w1_p.shape, lambda g: (0, 0)),             # conv1 weights (invariant)
            pl.BlockSpec(b1_c.shape, lambda g: (0, 0)),             # conv1 bias
            pl.BlockSpec(masks.shape, lambda g: (0, 0)),            # halo masks (invariant)
        ],
        out_specs=pl.BlockSpec((nb, cout, hw), lambda g: (g, 0, 0)),
        compiler_params=pltpu.CompilerParams(
            # Batch steps shard across TensorCores on v7x; no vmem_limit override —
            # per-step footprint is far below the default scoped VMEM limit.
            dimension_semantics=("parallel",),
        ),
    )(x_flat, w0_p, b0_p, w1_p, b1_c, masks)

    return y_flat.reshape(n, cout, h_img, w_img)


def _reference_forward(x_nchw, params, res_scale=1.0):
    """Pure-JAX reference (mirrors the PyTorch module) for the correctness check."""
    w0, b0, w1, b1 = params
    dn = ('NCHW', 'OIHW', 'NCHW')
    prec = jax.lax.Precision.HIGHEST
    h = jax.lax.conv_general_dilated(x_nchw, w0, (1, 1), 'SAME',
                                     dimension_numbers=dn, precision=prec)
    h = jnp.maximum(h + b0.reshape(1, -1, 1, 1), 0.0)
    r = jax.lax.conv_general_dilated(h, w1, (1, 1), 'SAME',
                                     dimension_numbers=dn, precision=prec)
    r = r + b1.reshape(1, -1, 1, 1)
    return x_nchw + res_scale * r


if __name__ == "__main__":
    # in_nc = mid_nc = out_nc = 4, spatial 16x16, batch 2
    N, C, H, W = 2, 4, 16, 16
    key = jax.random.PRNGKey(0)
    kx_, kw0, kb0, kw1, kb1 = jax.random.split(key, 5)

    x = jax.random.normal(kx_, (N, C, H, W), dtype=jnp.float32)
    w0 = 0.1 * jax.random.normal(kw0, (C, C, 3, 3), dtype=jnp.float32)   # OIHW
    b0 = 0.1 * jax.random.normal(kb0, (C,), dtype=jnp.float32)
    w1 = 0.1 * jax.random.normal(kw1, (C, C, 3, 3), dtype=jnp.float32)   # OIHW
    b1 = 0.1 * jax.random.normal(kb1, (C,), dtype=jnp.float32)
    params = (w0, b0, w1, b1)

    ref = _reference_forward(x, params, res_scale=1.0)

    # Exact path: f32 MXU operands, default batching (1 image / step -> 2 grid steps).
    out_f32 = jax.block_until_ready(
        resnet_block_forward(x, params, res_scale=1.0, mxu_dtype=None))
    assert out_f32.shape == (N, C, H, W)
    assert jnp.allclose(out_f32, ref, atol=5e-4, rtol=5e-4), "f32 path mismatch"

    # Fast path: default bf16 MXU operands, both images folded into one grid step.
    out_bf16 = jax.block_until_ready(
        resnet_block_forward(x, params, res_scale=1.0, images_per_step=2))
    assert out_bf16.shape == (N, C, H, W)
    assert jnp.allclose(out_bf16, ref, atol=3e-2, rtol=3e-2), "bf16 path mismatch"

    print("KERNEL_OK")
</pallas_src>

<mosaic_0001>
module attributes {stable_mosaic.version = 11 : i64} {
  func.func @_resnet_block_kernel(%arg0: i32, %arg1: memref<1x8x256xf32, #tpu.memory_space<vmem>>, %arg2: memref<24x24xf32, #tpu.memory_space<vmem>>, %arg3: memref<8x1xf32, #tpu.memory_space<vmem>>, %arg4: memref<24x24xf32, #tpu.memory_space<vmem>>, %arg5: memref<4x1xf32, #tpu.memory_space<vmem>>, %arg6: memref<3x512xf32, #tpu.memory_space<vmem>>, %arg7: memref<1x4x256xf32, #tpu.memory_space<vmem>>) attributes {dimension_semantics = [#tpu.dimension_semantics<parallel>], iteration_bounds = array<i64: 2>, scalar_prefetch = 0 : i64, scratch_operands = 0 : i64, tpu.core_type = #tpu.core_type<tc>, window_params = [{transform_indices = @transform_0, window_bounds = array<i64: 1, 8, 256>}, {pipeline_mode = #tpu.pipeline_mode<synchronous>, transform_indices = @transform_1, window_bounds = array<i64: 24, 24>}, {pipeline_mode = #tpu.pipeline_mode<synchronous>, transform_indices = @transform_2, window_bounds = array<i64: 8, 1>}, {pipeline_mode = #tpu.pipeline_mode<synchronous>, transform_indices = @transform_3, window_bounds = array<i64: 24, 24>}, {pipeline_mode = #tpu.pipeline_mode<synchronous>, transform_indices = @transform_4, window_bounds = array<i64: 4, 1>}, {pipeline_mode = #tpu.pipeline_mode<synchronous>, transform_indices = @transform_5, window_bounds = array<i64: 3, 512>}, {transform_indices = @transform_6, window_bounds = array<i64: 1, 4, 256>}]} {
    %c0 = arith.constant 0 : index
    %c0_0 = arith.constant 0 : index
    %0 = vector.load %arg6[%c0, %c0_0] : memref<3x512xf32, #tpu.memory_space<vmem>>, vector<1x512xf32>
    %c1 = arith.constant 1 : index
    %c0_1 = arith.constant 0 : index
    %1 = vector.load %arg6[%c1, %c0_1] : memref<3x512xf32, #tpu.memory_space<vmem>>, vector<1x512xf32>
    %c2 = arith.constant 2 : index
    %c0_2 = arith.constant 0 : index
    %2 = vector.load %arg6[%c2, %c0_2] : memref<3x512xf32, #tpu.memory_space<vmem>>, vector<1x512xf32>
    %c0_3 = arith.constant 0 : index
    %c0_4 = arith.constant 0 : index
    %c0_5 = arith.constant 0 : index
    %3 = vector.load %arg1[%c0_3, %c0_4, %c0_5] : memref<1x8x256xf32, #tpu.memory_space<vmem>>, vector<1x8x256xf32>
    %4 = vector.shape_cast %3 : vector<1x8x256xf32> to vector<8x256xf32>
    %cst = arith.constant 0.000000e+00 : f32
    %5 = vector.broadcast %cst : f32 to vector<8x128xf32>
    %6 = tpu.concatenate %5, %4, %5 in 1 : vector<8x128xf32>, vector<8x256xf32>, vector<8x128xf32> -> vector<8x512xf32>
    %c0_6 = arith.constant 0 : index
    %c0_7 = arith.constant 0 : index
    %7 = vector.load %arg2[%c0_6, %c0_7] : memref<24x24xf32, #tpu.memory_space<vmem>>, vector<24x24xf32>
    %8 = vector.broadcast %0 : vector<1x512xf32> to vector<8x512xf32>
    %9 = arith.mulf %6, %8 : vector<8x512xf32>
    %c1_i32 = arith.constant 1 : i32
    %10 = tpu.dynamic_rotate %9 by %c1_i32 dim 1 : vector<8x512xf32>, i32 -> vector<8x512xf32>
    %11 = vector.broadcast %1 : vector<1x512xf32> to vector<8x512xf32>
    %12 = arith.mulf %6, %11 : vector<8x512xf32>
    %c511_i32 = arith.constant 511 : i32
    %13 = tpu.dynamic_rotate %12 by %c511_i32 dim 1 : vector<8x512xf32>, i32 -> vector<8x512xf32>
    %14 = tpu.concatenate %10, %6, %13 in 0 : vector<8x512xf32>, vector<8x512xf32>, vector<8x512xf32> -> vector<24x512xf32>
    %cst_8 = arith.constant dense<0.000000e+00> : vector<24x512xf32>
    %15 = tpu.matmul %7, %14, %cst_8 {dimension_numbers = #tpu.dot_dimension_numbers<[1], [0], [0], [1], [0, 0, 1, 1], [], []>} : vector<24x24xf32>, vector<24x512xf32>, vector<24x512xf32> -> vector<24x512xf32>
    %16 = vector.extract_strided_slice %15 {offsets = [0, 0], sizes = [8, 512], strides = [1, 1]} : vector<24x512xf32> to vector<8x512xf32>
    %c16_i32 = arith.constant 16 : i32
    %17 = tpu.dynamic_rotate %16 by %c16_i32 dim 1 : vector<8x512xf32>, i32 -> vector<8x512xf32>
    %18 = vector.extract_strided_slice %15 {offsets = [8, 0], sizes = [8, 512], strides = [1, 1]} : vector<24x512xf32> to vector<8x512xf32>
    %19 = arith.addf %17, %18 : vector<8x512xf32>
    %20 = vector.extract_strided_slice %15 {offsets = [16, 0], sizes = [8, 512], strides = [1, 1]} : vector<24x512xf32> to vector<8x512xf32>
    %c496_i32 = arith.constant 496 : i32
    %21 = tpu.dynamic_rotate %20 by %c496_i32 dim 1 : vector<8x512xf32>, i32 -> vector<8x512xf32>
    %22 = arith.addf %19, %21 : vector<8x512xf32>
    %c0_9 = arith.constant 0 : index
    %c0_10 = arith.constant 0 : index
    %23 = vector.load %arg3[%c0_9, %c0_10] : memref<8x1xf32, #tpu.memory_space<vmem>>, vector<8x1xf32>
    %24 = vector.broadcast %23 : vector<8x1xf32> to vector<8x512xf32>
    %25 = arith.addf %22, %24 : vector<8x512xf32>
    %cst_11 = arith.constant 0.000000e+00 : f32
    %26 = vector.broadcast %cst_11 : f32 to vector<8x512xf32>
    %27 = arith.maximumf %25, %26 : vector<8x512xf32>
    %28 = vector.broadcast %2 : vector<1x512xf32> to vector<8x512xf32>
    %29 = arith.mulf %27, %28 : vector<8x512xf32>
    %c0_12 = arith.constant 0 : index
    %c0_13 = arith.constant 0 : index
    %30 = vector.load %arg4[%c0_12, %c0_13] : memref<24x24xf32, #tpu.memory_space<vmem>>, vector<24x24xf32>
    %31 = vector.broadcast %0 : vector<1x512xf32> to vector<8x512xf32>
    %32 = arith.mulf %29, %31 : vector<8x512xf32>
    %c1_i32_14 = arith.constant 1 : i32
    %33 = tpu.dynamic_rotate %32 by %c1_i32_14 dim 1 : vector<8x512xf32>, i32 -> vector<8x512xf32>
    %34 = vector.broadcast %1 : vector<1x512xf32> to vector<8x512xf32>
    %35 = arith.mulf %29, %34 : vector<8x512xf32>
    %c511_i32_15 = arith.constant 511 : i32
    %36 = tpu.dynamic_rotate %35 by %c511_i32_15 dim 1 : vector<8x512xf32>, i32 -> vector<8x512xf32>
    %37 = tpu.concatenate %33, %29, %36 in 0 : vector<8x512xf32>, vector<8x512xf32>, vector<8x512xf32> -> vector<24x512xf32>
    %cst_16 = arith.constant dense<0.000000e+00> : vector<24x512xf32>
    %38 = tpu.matmul %30, %37, %cst_16 {dimension_numbers = #tpu.dot_dimension_numbers<[1], [0], [0], [1], [0, 0, 1, 1], [], []>} : vector<24x24xf32>, vector<24x512xf32>, vector<24x512xf32> -> vector<24x512xf32>
    %39 = vector.extract_strided_slice %38 {offsets = [0, 0], sizes = [8, 512], strides = [1, 1]} : vector<24x512xf32> to vector<8x512xf32>
    %c16_i32_17 = arith.constant 16 : i32
    %40 = tpu.dynamic_rotate %39 by %c16_i32_17 dim 1 : vector<8x512xf32>, i32 -> vector<8x512xf32>
    %41 = vector.extract_strided_slice %38 {offsets = [8, 0], sizes = [8, 512], strides = [1, 1]} : vector<24x512xf32> to vector<8x512xf32>
    %42 = arith.addf %40, %41 : vector<8x512xf32>
    %43 = vector.extract_strided_slice %38 {offsets = [16, 0], sizes = [8, 512], strides = [1, 1]} : vector<24x512xf32> to vector<8x512xf32>
    %c496_i32_18 = arith.constant 496 : i32
    %44 = tpu.dynamic_rotate %43 by %c496_i32_18 dim 1 : vector<8x512xf32>, i32 -> vector<8x512xf32>
    %45 = arith.addf %42, %44 : vector<8x512xf32>
    %46 = vector.extract_strided_slice %45 {offsets = [0, 128], sizes = [4, 256], strides = [1, 1]} : vector<8x512xf32> to vector<4x256xf32>
    %c0_19 = arith.constant 0 : index
    %c0_20 = arith.constant 0 : index
    %47 = vector.load %arg5[%c0_19, %c0_20] : memref<4x1xf32, #tpu.memory_space<vmem>>, vector<4x1xf32>
    %48 = vector.broadcast %47 : vector<4x1xf32> to vector<4x256xf32>
    %49 = arith.addf %46, %48 : vector<4x256xf32>
    %50 = vector.extract_strided_slice %4 {offsets = [0, 0], sizes = [4, 256], strides = [1, 1]} : vector<8x256xf32> to vector<4x256xf32>
    %cst_21 = arith.constant 1.000000e+00 : f32
    %51 = vector.broadcast %cst_21 : f32 to vector<4x256xf32>
    %52 = arith.mulf %51, %49 : vector<4x256xf32>
    %53 = arith.addf %50, %52 : vector<4x256xf32>
    %c0_22 = arith.constant 0 : index
    %c0_23 = arith.constant 0 : index
    %c0_24 = arith.constant 0 : index
    %54 = vector.load %arg7[%c0_22, %c0_23, %c0_24] : memref<1x4x256xf32, #tpu.memory_space<vmem>>, vector<1x4x256xf32>
    %55 = vector.shape_cast %54 : vector<1x4x256xf32> to vector<4x256xf32>
    %56 = vector.shape_cast %53 : vector<4x256xf32> to vector<1x4x256xf32>
    tpu.vector_store %arg7[%c0_22, %c0_23, %c0_24], %56 {strides = array<i32>} : memref<1x4x256xf32, #tpu.memory_space<vmem>>, vector<1x4x256xf32>,
    return
  }
  func.func @transform_0(%arg0: i32) -> (i32, i32, i32) {
    %c0_i32 = arith.constant 0 : i32
    %c0_i32_0 = arith.constant 0 : i32
    %c0_i32_1 = arith.constant 0 : i32
    return %arg0, %c0_i32, %c0_i32_0 : i32, i32, i32
  }
  func.func @transform_1(%arg0: i32) -> (i32, i32) {
    %c0_i32 = arith.constant 0 : i32
    %c0_i32_0 = arith.constant 0 : i32
    %c0_i32_1 = arith.constant 0 : i32
    return %c0_i32, %c0_i32_0 : i32, i32
  }
  func.func @transform_2(%arg0: i32) -> (i32, i32) {
    %c0_i32 = arith.constant 0 : i32
    %c0_i32_0 = arith.constant 0 : i32
    %c0_i32_1 = arith.constant 0 : i32
    return %c0_i32, %c0_i32_0 : i32, i32
  }
  func.func @transform_3(%arg0: i32) -> (i32, i32) {
    %c0_i32 = arith.constant 0 : i32
    %c0_i32_0 = arith.constant 0 : i32
    %c0_i32_1 = arith.constant 0 : i32
    return %c0_i32, %c0_i32_0 : i32, i32
  }
  func.func @transform_4(%arg0: i32) -> (i32, i32) {
    %c0_i32 = arith.constant 0 : i32
    %c0_i32_0 = arith.constant 0 : i32
    %c0_i32_1 = arith.constant 0 : i32
    return %c0_i32, %c0_i32_0 : i32, i32
  }
  func.func @transform_5(%arg0: i32) -> (i32, i32) {
    %c0_i32 = arith.constant 0 : i32
    %c0_i32_0 = arith.constant 0 : i32
    %c0_i32_1 = arith.constant 0 : i32
    return %c0_i32, %c0_i32_0 : i32, i32
  }
  func.func @transform_6(%arg0: i32) -> (i32, i32, i32) {
    %c0_i32 = arith.constant 0 : i32
    %c0_i32_0 = arith.constant 0 : i32
    %c0_i32_1 = arith.constant 0 : i32
    return %arg0, %c0_i32, %c0_i32_0 : i32, i32, i32
  }
}

</mosaic_0001>

<bundles_post_ra>
// kernel: tpu_custom_call.1
= control target key start
LH: loop header
LB: loop body
LE: loop exit
PB: predicated region body
PF: predicated region fallthrough
CT: control target
= control target key end

     0   :  { %11 = vsyncpa [#allocation3], 0  ;;  %s1580_s0 = inlined_call_operand.hbm [shape: f32[2,8,256], index: 0, kind: input, shape index: {}]   ;;  %s1581_s1 = inlined_call_operand.hbm [shape: f32[24,24], index: 1, kind: input, shape index: {}]   ;;  %s1582_s2 = inlined_call_operand.vmem [shape: f32[8,1], index: 2, kind: input, shape index: {}]   ;;  %s1583_s3 = inlined_call_operand.hbm [shape: f32[24,24], index: 3, kind: input, shape index: {}]   ;;  %s1584_s4 = inlined_call_operand.vmem [shape: f32[4,1], index: 4, kind: input, shape index: {}]   ;;  %s1585_s5 = inlined_call_operand.hbm [shape: f32[3,512], index: 5, kind: input, shape index: {}]   ;;  %s1586_s6 = inlined_call_operand.hbm [shape: f32[2,4,256], index: 6, kind: output, shape index: {}]  }
   0x1   :  { %13 = vsyncpa [#allocation3 + $0x1], 0 }
   0x2   :  { %14 = vsyncpa [#allocation6], 0 }
   0x3   :  { %15 = vsyncpa [#allocation9], 0 }
   0x4   :  { %16 = vsyncpa [#allocation4], 0 }
   0x5   :  { %18 = vsyncpa [#allocation4 + $0x1], 0  ;;  %s1249_s21 = smov 0   ;;  %s1251_s22 = smov 0  }
   0x6   :  { %s1253_s23 = smov 0   ;;  %s1255_s24 = smov 0  }
   0x7 LB: > { %s197_s27 = sshll.u32 %s1581_s1, 4  ;;  %s1273_s28 = sadd.s32 4294967295, %s1201_s24   ;;  %s1201_s24 = sphi %s1255_s24, %s1597_s24   ;;  %s1197_s23 = sphi %s1253_s23, %s1596_s23   ;;  %s1193_s22 = sphi %s1251_s22, %s1595_s22   ;;  %s1189_s21 = sphi %s1249_s21, %s1594_s21   ;;  %s198_s27 = int_to_ptr.hbm [resolvable:$true] %s197_s27 }
   0x8   : > { %p855_p0 = scmp.ge.s32.totalorder %s1201_s24, 1  ;;  %p45_p1 = scmp.eq.s32.totalorder %s1273_s28, 0 }
   0x9   : > { %p186_p2 = scmp.lt.s32.totalorder %s1201_s24, 3  ;;  %s1203_s30 = smov [#allocation5]  }
   0xa   : > { %s199_s7 = sshll.u32 %s1203_s30, 4  ;;  %s214_s10 = sshll.u32 %s1583_s3, 4  ;;  %s200_s7 = int_to_ptr.vmem [resolvable:$true] %s199_s7  ;;  %s215_s10 = int_to_ptr.hbm [resolvable:$true] %s214_s10 }
   0xb   : > { %p1278_p3 = pnand %p855_p0, %p186_p2  ;;  %s232_s14 = sshll.u32 %s1585_s5, 4  ;;  %s233_s14 = int_to_ptr.hbm [resolvable:$true] %s232_s14 }
   0xc   : > { %s1204_s15 = smov [#allocation7]   ;;  %s1205_s17 = smov 128  }
   0xd   : > { %p916_p4 = pneg %p1278_p3  ;;  %s216_s16 = sshll.u32 %s1204_s15, 4  ;;  %s217_s16 = int_to_ptr.vmem [resolvable:$true] %s216_s16 }
   0xe   : > { %s1206_s18 = smov 8   ;;  %s1207_s19 = smov [#allocation8]  }
   0xf   : > { %p1290_p6 = pnand %p916_p4, %p45_p1  ;;  %s234_s20 = sshll.u32 %s1207_s19, 4  ;;  %s235_s20 = int_to_ptr.vmem [resolvable:$true] %s234_s20 }
  0x10   : > { %s854_s25 = sadd.s32 4294967294, %s1201_s24   ;;  %s1305_s26 = sadd.s32 1, %s1201_s24  }
  0x11   : > { %919 = dma.hbm_to_vmem [thread:$0]  (!%p1290_p6), %s198_s27, 384, %s200_s7, [#allocation6], %s1205_s17, %s1205_s17, %s1206_s18  }
  0x12   : > { %922 = dma.hbm_to_vmem [thread:$0]  (!%p1290_p6), %s215_s10, 384, %s217_s16, [#allocation6], %s1205_s17, %s1205_s17, %s1206_s18  }
  0x13   : > { %925 = dma.hbm_to_vmem [thread:$0]  (!%p1290_p6), %s233_s14, 256, %s235_s20, [#allocation9]  }
  0x14   : > { %s31_s30 = sadd.s32 1, %s1197_s23  ;;  %s28_s27 = ssub.s32 %s1201_s24, %s1305_s26 }
  0x15   : > { %p38_p7 = scmp.ne.s32.totalorder %s1197_s23, %s1193_s22  ;;  %p29_p8 = scmp.eq.s32.totalorder %s28_s27, 0 }
  0x16   : > { %p39_p9 = scmp.eq.s32.totalorder %s1201_s24, 0  ;;  %p44_p10 = scmp.ne.s32.totalorder %s1193_s22, %s1189_s21 }
  0x17   : > { %p173_p11 = scmp.eq.s32.totalorder %s1273_s28, 1  ;;  %p179_p0 = scmp.eq.s32.totalorder %s854_s25, 1 }
  0x18   : > { %s1317_s7 = scalar_select %p29_p8, %s1197_s23, %s31_s30  }
  0x19   : > { %p1321_p12 = por %p45_p1, %p44_p10  ;;  %p1325_p13 = por %p173_p11, %p38_p7 }
  0x1a   : > { %p40_p2 = por %p39_p9, %p38_p7  ;;  %s245_s10 = sand.u32 1, %s1197_s23  }
  0x1b   : > { %p1330_p4 = por %p179_p0, %p44_p10  ;;  %p937_p6 = scmp.lt.s32.totalorder %s1201_s24, 2 }
  0x1c   : > { %s860_s12 = sshll.u32 %s245_s10, 4  ;;  %s898_s13 = sshll.u32 %s1201_s24, 4 }
  0x1d   : > { %s254_s16 = scalar_lea.hbm %s1580_s0, %s898_s13  ;;  %s249_s18 = scalar_lea.vmem [#allocation2], %s860_s12 }
  0x1e   : > { %s256_s17 = sshll.u32 %s254_s16, 4  ;;  %s258_s19 = sshll.u32 %s249_s18, 4  ;;  %s257_s17 = int_to_ptr.hbm [resolvable:$true] %s256_s17  ;;  %s259_s19 = int_to_ptr.vmem [resolvable:$true] %s258_s19 }
  0x1f   : > { %p1339_p8 = pnand %p937_p6, %p40_p2  ;;  %s246_s25 = scalar_lea.sflag [#allocation3], %s245_s10 }
  0x20   : > { %s1097_s30 = sshra.s32 %s257_s17, 4  ;;  %s1104_s12 = scalar_lea.hbm %s1580_s0, 32  ;;  %s1098_s30 = int_to_ptr.hbm [resolvable:$true] %s1097_s30 }
  0x21   : > { %s1099_s27 = scalar_lea.hbm %s1098_s30, 16  ;;  %p1101_p9 = pneg %p1339_p8 }
  0x22   : > { %p1100_p7 = scmp.ne.s32.totalorder %s1098_s30, %s1099_s27  ;;  %p1105_p0 = scmp.lt.s32.totalorder %s1098_s30, %s1580_s0 }
  0x23   : > { %p1106_p2 = scmp.lt.s32.totalorder %s1104_s12, %s1099_s27 }
  0x24   : > { %p1102_p10 = pnand %p1101_p9, %p1100_p7 }
  0x25   : > { %p1107_p6 = por %p1106_p2, %p1105_p0 }
  0x26   : > { %p1103_p11 = pneg %p1102_p10 }
  0x28   : > { %p1108_p5 = pnand %p1107_p6, %p1103_p11 }
  0x2a   : > { %1111 = shalt.err (!%p1108_p5)
}
  0x2b   : > { %929 = dma.hbm_to_vmem [thread:$0]  (!%p1339_p8), %s257_s17, 256, %s259_s19, %s246_s25  }
  0x2c   : > { %267 = sbr.rel (%p1278_p3) target bundleno = 872 (0x368), region = 44  ;;  %s1356_s10 = sand.u32 (!%p1278_p3), 1, %s1193_s22  }
  0x2d   : > { %s864_s18 = sshll.u32 (!%p1278_p3), %s1356_s10, 4  ;;  %s270_s13 = scalar_lea.sflag (!%p1278_p3), [#allocation3], %s1356_s10 }
  0x2e   : > { %s273_s14 = scalar_lea.vmem (!%p1278_p3), [#allocation2], %s864_s18 }
  0x31   : > { %1172 = dma.done.wait (%p1321_p12), %s270_s13, 256  }
  0x32   : > { %1174 = vsyncadd (%p1321_p12), %s270_s13, 4294967040 }
  0x33   : > { %1176 = dma.done.wait (%p45_p1), [#allocation6], 768  }
  0x34   : > { %1178 = vsyncadd (%p45_p1), [#allocation6], 4294966528 }
  0x35   : > { %1180 = dma.done.wait (%p45_p1), [#allocation9], 256  }
  0x36   : > { %1182 = vsyncadd (%p45_p1), [#allocation9], 4294967040  ;;  %v1372_v0 = vld [vmem:[#allocation8 + $0x1] ss:$4 sm:$0xf]  ;;  %s1208_s29 = smov 127   ;;  %v349_v22 = vlaneseq }
  0x37   : > { %v1374_v1 = vld [vmem:[%s273_s14 + $0x8] sm:$0xff]  ;;  %v357_v2 = vperm.slane %v1372_v0, 0  ;;  %v359_v3 = vperm.slane %v1372_v0, 2  ;;  %v1380_v5 = vld [vmem:[%s273_s14] sm:$0xff]  ;;  %v358_v8 = vperm.slane %v1372_v0, 1  ;;  %v360_v17 = vperm.slane %v1372_v0, 3 }
  0x38   : > { %v1378_v4 = vld [vmem:[#allocation8] ss:$4 sm:$0xf]  ;;  %s1209_s8 = smov 1   ;;  %v1414_v24 = vand.u32 127, %v349_v22  ;;  %v1210_v33 = vmov 0.0  }
  0x39   : > { %v330_v6 = vperm.slane %v1378_v4, 1  ;;  %v331_v7 = vperm.slane %v1378_v4, 2  ;;  %v365_v9 = vmul.f32 0.0, %v357_v2  ;;  %v367_v10 = vmul.f32 %v359_v3, %v1374_v1  ;;  %v325_v34 = vld [vmem:[#allocation5] sm:$0xff]  ;;  %v326_v44 = vld [vmem:[#allocation5 + $0x8] sm:$0xff]  ;;  %v327_v45 = vld [vmem:[#allocation5 + $0x10] sm:$0xff] }
  0x3a   : > { %v366_v13 = vmul.f32 %v358_v8, %v1380_v5  ;;  %v329_v16 = vperm.slane %v1378_v4, 0  ;;  %v332_v18 = vperm.slane %v1378_v4, 3  ;;  %v368_v20 = vmul.f32 0.0, %v360_v17  ;;  %s1212_s17 = smov 16   ;;  %s1213_s19 = smov 112   ;;  %v530_v57 = vld [vmem:[%s1582_s2] sm:$0xff] }
  0x3b   : > { %v338_v11 = vmul.f32 %v330_v6, %v1380_v5  ;;  %v339_v12 = vmul.f32 %v331_v7, %v1374_v1  ;;  %v985_v14 = vpack.i.bf16 %v367_v10, %v365_v9  ;;  %vm377_vm0 = vcmp.lt.s32.totalorder %v1414_v24, 127  ;;  %s868_s12 = sshll.u32 %s1356_s10, 3  ;;  %s899_s15 = sshll.u32 %s1273_s28, 3 }
  0x3c   : > { %371 = vrot.lane.b32.xlu2 %v366_v13, %s1208_s29  ;;  %v337_v19 = vmul.f32 0.0, %v329_v16  ;;  %v340_v21 = vmul.f32 0.0, %v332_v18  ;;  %vm351_vm1 = vcmp.lt.s32.totalorder %v1414_v24, 1  ;;  %vm382_vm2 = vcmask 195584   ;;  %s750_s13 = scalar_lea.hbm %s1586_s6, %s899_s15  ;;  %s317_s14 = scalar_lea.vmem [#allocation10], %s868_s12 }
  0x3d   : > { %v990_v15 = vpack.i.bf16 %v339_v12, %v338_v11  ;;  %986 = vrot.lane.b32.xlu0 %v985_v14, %s1208_s29  ;;  %v1211_v46 = vmov 0   ;;  %vm504_vm3 = vcmp.lt.s32.totalorder %v1414_v24, 16  ;;  %vm521_vm4 = vcmp.lt.s32.totalorder %v1414_v24, 112  ;;  %s739_s28 = scalar_lea.sflag [#allocation4], %s1356_s10  ;;  %s1147_s30 = scalar_lea.hbm %s1586_s6, 16 }
  0x3e   : > { %995 = vset.pattern.permute.xlu2 %v1211_v46  ;;  %1006 = vset.pattern.permute.xlu0 %v1211_v46  ;;  %vm734_vm5 = vcmask 1043456  }
  0x3f   : > { %991 = vrot.lane.b32.xlu1 %v990_v15, %s1209_s8 }
  0x44   : > { %341 = vrot.lane.b32.xlu2 %v337_v19, %s1209_s8 }
  0x45   : > { %375 = vrot.lane.b32.xlu0 %v368_v20, %s1208_s29 }
  0x47   : > { %347 = vrot.lane.b32.xlu1 %v340_v21, %s1209_s8 }
  0x96   : > { %v372_v23 = vpop.permute.xlu2 %371 }
  0x9e   : > { %v342_v32 = vpop.permute.xlu2 %341 }
  0xaf   : > { %v987_v25 = vpop.permute.xlu0 %986 }
  0xb0   : > { %v989_v26 = vunpack.i.h.bf16 %v987_v25  ;;  %v988_v27 = vunpack.i.l.bf16 %v987_v25  ;;  %v322_v25 = vld [vmem:[#allocation8 + $0x2] ss:$4 sm:$0xf] }
  0xb1   : > { %v992_v28 = vpop.permute.xlu1 %991 }
  0xb2   : > { %v993_v29 = vunpack.i.l.bf16 %v992_v28  ;;  %v380_v30 = vsel %vm377_vm0, %v988_v27, %v372_v23  ;;  %v379_v31 = vsel %vm377_vm0, %v372_v23, %v989_v26  ;;  %v994_v37 = vunpack.i.h.bf16 %v992_v28 }
  0xb3   : > { %405 = vmatpush.msra.mxu0 %v380_v30  ;;  %431 = vmatpush.msra.mxu1 %v379_v31 }
  0xb4   : > { %v354_v35 = vsel %vm351_vm1, %v342_v32, %v993_v29  ;;  %v353_v42 = vsel %vm351_vm1, %v993_v29, %v994_v37 }
  0xb5   : > { %432 = vmatpush.msra.mxu1 %v1380_v5  ;;  %406 = vmatpush.msra.mxu0 %v1210_v33 }
  0xb7   : > { %v376_v36 = vpop.permute.xlu0 %375  ;;  %433 = vmatpush.msra.mxu1 %v354_v35 }
  0xb8   : > { %872 = vmatmul.msk.f32.vlgmr.msra.gmra.mxu1 %vm382_vm2, %v325_v34  ;;  %v378_v39 = vsel %vm377_vm0, %v989_v26, %v376_v36  ;;  %v381_v40 = vsel %vm377_vm0, %v376_v36, %v988_v27 }
  0xb9   : > { %v348_v38 = vpop.permute.xlu1 %347  ;;  %457 = vmatpush.msra.mxu2 %v378_v39  ;;  %483 = vmatpush.msra.mxu3 %v381_v40  ;;  %v547_v40 = vperm.slane %v322_v25, 2 }
  0xba   : > { %v355_v41 = vsel %vm351_vm1, %v348_v38, %v342_v32  ;;  %v352_v43 = vsel %vm351_vm1, %v994_v37, %v348_v38  ;;  %v546_v38 = vperm.slane %v322_v25, 1 }
  0xbb   : > { %407 = vmatpush.msra.mxu0 %v355_v41  ;;  %458 = vmatpush.msra.mxu2 %v1374_v1  ;;  %v548_v41 = vperm.slane %v322_v25, 3 }
  0xbc   : > { %869 = vmatmul.msk.f32.vlgmr.msra.gmra.mxu0 %vm382_vm2, %v325_v34  ;;  %484 = vmatpush.msra.mxu3 %v1210_v33 }
  0xbd   : > { %459 = vmatpush.msra.mxu2 %v353_v42 }
  0xbe   : > { %485 = vmatpush.msra.mxu3 %v352_v43  ;;  %875 = vmatmul.msk.f32.vlgmr.msra.gmra.mxu2 %vm382_vm2, %v325_v34 }
  0xbf   : > { %878 = vmatmul.msk.f32.vlgmr.msra.gmra.mxu3 %vm382_vm2, %v325_v34  ;;  %v545_v34 = vperm.slane %v322_v25, 0 }
  0xc0   : > { %873 = vmatmul.msk.f32.gmra.mxu1 %vm382_vm2, %v326_v44 }
  0xc4   : > { %870 = vmatmul.msk.f32.gmra.mxu0 %vm382_vm2, %v326_v44 }
  0xc6   : > { %876 = vmatmul.msk.f32.gmra.mxu2 %vm382_vm2, %v326_v44 }
  0xc7   : > { %879 = vmatmul.msk.f32.gmra.mxu3 %vm382_vm2, %v326_v44 }
  0xc8   : > { %874 = vmatmul.msk.f32.gmra.mxu1 %vm382_vm2, %v327_v45 }
  0xcc   : > { %871 = vmatmul.msk.f32.gmra.mxu0 %vm382_vm2, %v327_v45 }
  0xce   : > { %877 = vmatmul.msk.f32.gmra.mxu2 %vm382_vm2, %v327_v45 }
  0xcf   : > { %880 = vmatmul.msk.f32.gmra.mxu3 %vm382_vm2, %v327_v45 }
 0x135   : > { %v435_v47 = vpop.f32.mrf.mxu1 }
 0x136   : > { %498 = vrot.lane.b32.xlu1 %v435_v47, %s1212_s17 }
 0x139   : > { %v409_v48 = vpop.f32.mrf.mxu0 }
 0x13a   : > { %496 = vrot.lane.b32.xlu0 %v409_v48, %s1212_s17 }
 0x13d   : > { %v438_v49 = vpop.f32.mrf.mxu1 }
 0x141   : > { %v412_v50 = vpop.f32.mrf.mxu0  ;;  %v461_v51 = vpop.f32.mrf.mxu2 }
 0x142   : > { %v487_v52 = vpop.f32.mrf.mxu3  ;;  %500 = vrot.lane.b32.xlu2 %v461_v51, %s1212_s17 }
 0x143   : > { %502 = vrot.lane.b32.xlu0 %v487_v52, %s1212_s17 }
 0x145   : > { %v441_v53 = vpop.f32.mrf.mxu1 }
 0x149   : > { %v415_v54 = vpop.f32.mrf.mxu0  ;;  %v464_v55 = vpop.f32.mrf.mxu2 }
 0x14a   : > { %513 = vrot.lane.b32.xlu1 %v415_v54, %s1213_s19  ;;  %v490_v56 = vpop.f32.mrf.mxu3  ;;  %515 = vrot.lane.b32.xlu2 %v441_v53, %s1213_s19 }
 0x151   : > { %v467_v58 = vpop.f32.mrf.mxu2 }
 0x152   : > { %v493_v59 = vpop.f32.mrf.mxu3  ;;  %517 = vrot.lane.b32.xlu0 %v467_v58, %s1213_s19  ;;  %533 = vperm.xlu2 %995, %v530_v57  }
 0x153   : > { %519 = vrot.lane.b32.xlu1 %v493_v59, %s1213_s19 }
 0x19c   : > { %v501_v60 = vpop.permute.xlu2 %500 }
 0x1a4   : > { %v516_v63 = vpop.permute.xlu2 %515 }
 0x1a8   : > { %v499_v62 = vpop.permute.xlu1 %498 }
 0x1a9   : > { %v506_v20 = vsel %vm504_vm3, %v499_v62, %v501_v60 }
 0x1aa   : > { %v511_v27 = vadd.f32 %v506_v20, %v464_v55 }
 0x1ac   : > { %v497_v61 = vpop.permute.xlu0 %496  ;;  %v534_v15 = vpop.permute.xlu2 %533 }
 0x1ad   : > { %v507_v19 = vsel %vm504_vm3, %v497_v61, %v499_v62 }
 0x1ae   : > { %v510_v23 = vadd.f32 %v507_v19, %v438_v49  ;;  %v559_v19 = vld [vmem:[#allocation7 + $0x10] sm:$0xff] }
 0x1b5   : > { %v503_v9 = vpop.permute.xlu0 %502 }
 0x1b6   : > { %v508_v10 = vsel %vm504_vm3, %v503_v9, %v497_v61  ;;  %v505_v21 = vsel %vm504_vm3, %v501_v60, %v503_v9 }
 0x1b7   : > { %v509_v13 = vadd.f32 %v508_v10, %v412_v50  ;;  %v512_v28 = vadd.f32 %v505_v21, %v490_v56 }
 0x1bc   : > { %v514_v11 = vpop.permute.xlu1 %513 }
 0x1bd   : > { %v524_v12 = vsel %vm521_vm4, %v514_v11, %v516_v63 }
 0x1be   : > { %v526_v14 = vadd.f32 %v524_v12, %v509_v13 }
 0x1c0   : > { %v536_v22 = vadd.f32 %v534_v15, %v526_v14 }
 0x1c2   : > { %v540_v35 = vmax.f32 %v536_v22, 0.0 }
 0x1c4   : > { %v518_v26 = vpop.permute.xlu0 %517  ;;  %v553_v45 = vmul.f32 %v545_v34, %v540_v35 }
 0x1c5   : > { %v523_v29 = vsel %vm521_vm4, %v516_v63, %v518_v26  ;;  %v520_v30 = vpop.permute.xlu1 %519  ;;  %v557_v63 = vld [vmem:[#allocation7] sm:$0xff] }
 0x1c6   : > { %v527_v31 = vadd.f32 %v523_v29, %v510_v23  ;;  %v522_v32 = vsel %vm521_vm4, %v518_v26, %v520_v30  ;;  %v525_v33 = vsel %vm521_vm4, %v520_v30, %v514_v11  ;;  %v576_v54 = vmul.f32 %v553_v45, %v357_v2 }
 0x1c7   : > { %v528_v36 = vadd.f32 %v522_v32, %v511_v27  ;;  %v529_v37 = vadd.f32 %v525_v33, %v512_v28  ;;  %v560_v2 = vmul.f32 %v553_v45, %v329_v16  ;;  %v721_v33 = vld [vmem:[%s1584_s4] sm:$0xf] }
 0x1c8   : > { %v537_v39 = vadd.f32 %v534_v15, %v527_v31 }
 0x1c9   : > { %v538_v42 = vadd.f32 %v534_v15, %v528_v36  ;;  %v539_v43 = vadd.f32 %v534_v15, %v529_v37  ;;  %v558_v15 = vld [vmem:[#allocation7 + $0x8] sm:$0xff] }
 0x1ca   : > { %v541_v44 = vmax.f32 %v537_v39, 0.0 }
 0x1cb   : > { %v542_v46 = vmax.f32 %v538_v42, 0.0  ;;  %v543_v47 = vmax.f32 %v539_v43, 0.0 }
 0x1cc   : > { %v554_v48 = vmul.f32 %v546_v38, %v541_v44 }
 0x1cd   : > { %v555_v49 = vmul.f32 %v547_v40, %v542_v46  ;;  %v556_v50 = vmul.f32 %v548_v41, %v543_v47 }
 0x1ce   : > { %v561_v51 = vmul.f32 %v554_v48, %v330_v6  ;;  %v577_v6 = vmul.f32 %v554_v48, %v358_v8 }
 0x1cf   : > { %v579_v52 = vmul.f32 %v556_v50, %v360_v17  ;;  %v562_v53 = vmul.f32 %v555_v49, %v331_v7  ;;  %v578_v55 = vmul.f32 %v555_v49, %v359_v3  ;;  %v563_v7 = vmul.f32 %v556_v50, %v332_v18 }
 0x1d1   : > { %586 = vrot.lane.b32.xlu1 %v579_v52, %s1208_s29  ;;  %v1001_v56 = vpack.i.bf16 %v562_v53, %v561_v51  ;;  %v996_v57 = vpack.i.bf16 %v578_v55, %v576_v54 }
 0x1d3   : > { %1002 = vrot.lane.b32.xlu2 %v1001_v56, %s1209_s8  ;;  %997 = vrot.lane.b32.xlu0 %v996_v57, %s1208_s29 }
 0x1d9   : > { %582 = vrot.lane.b32.xlu1 %v577_v6, %s1208_s29  ;;  %s752_s29 = sshll.u32 %s317_s14, 4  ;;  %s753_s29 = int_to_ptr.vmem [resolvable:$true] %s752_s29 }
 0x1db   : > { %570 = vrot.lane.b32.xlu0 %v563_v7, %s1209_s8  ;;  %564 = vrot.lane.b32.xlu2 %v560_v2, %s1209_s8  ;;  %s754_s8 = sshll.u32 %s750_s13, 4  ;;  %s755_s8 = int_to_ptr.hbm [resolvable:$true] %s754_s8 }
 0x22d   : > { %v1003_v17 = vpop.permute.xlu2 %1002 }
 0x22e   : > { %v1005_v61 = vunpack.i.h.bf16 %v1003_v17  ;;  %v1004_v18 = vunpack.i.l.bf16 %v1003_v17 }
 0x230   : > { %v573_v10 = vsel %vm351_vm1, %v1004_v18, %v1005_v61 }
 0x235   : > { %v565_v11 = vpop.permute.xlu2 %564 }
 0x236   : > { %v574_v14 = vsel %vm351_vm1, %v565_v11, %v1004_v18 }
 0x243   : > { %v587_v3 = vpop.permute.xlu1 %586 }
 0x245   : > { %v998_v58 = vpop.permute.xlu0 %997 }
 0x246   : > { %v1000_v59 = vunpack.i.h.bf16 %v998_v58  ;;  %v999_v60 = vunpack.i.l.bf16 %v998_v58 }
 0x248   : > { %v588_v0 = vsel %vm377_vm0, %v1000_v59, %v587_v3  ;;  %v591_v8 = vsel %vm377_vm0, %v587_v3, %v999_v60 }
 0x249   : > { %664 = vmatpush.msrb.mxu2 %v588_v0  ;;  %690 = vmatpush.msrb.mxu3 %v591_v8 }
 0x24b   : > { %v583_v4 = vpop.permute.xlu1 %582  ;;  %665 = vmatpush.msrb.mxu2 %v555_v49  ;;  %691 = vmatpush.msrb.mxu3 %v556_v50 }
 0x24c   : > { %v590_v16 = vsel %vm377_vm0, %v999_v60, %v583_v4  ;;  %v589_v62 = vsel %vm377_vm0, %v583_v4, %v1000_v59 }
 0x24d   : > { %v571_v9 = vpop.permute.xlu0 %570  ;;  %614 = vmatpush.msrb.mxu0 %v590_v16  ;;  %638 = vmatpush.msrb.mxu1 %v589_v62 }
 0x24e   : > { %666 = vmatpush.msrb.mxu2 %v573_v10  ;;  %v572_v12 = vsel %vm351_vm1, %v1005_v61, %v571_v9  ;;  %v575_v13 = vsel %vm351_vm1, %v571_v9, %v565_v11 }
 0x24f   : > { %887 = vmatmul.msk.f32.vlgmr.msrb.gmra.mxu2 %vm382_vm2, %v557_v63  ;;  %615 = vmatpush.msrb.mxu0 %v553_v45 }
 0x250   : > { %639 = vmatpush.msrb.mxu1 %v554_v48  ;;  %692 = vmatpush.msrb.mxu3 %v572_v12 }
 0x251   : > { %890 = vmatmul.msk.f32.vlgmr.msrb.gmra.mxu3 %vm382_vm2, %v557_v63  ;;  %616 = vmatpush.msrb.mxu0 %v575_v13 }
 0x252   : > { %640 = vmatpush.msrb.mxu1 %v574_v14  ;;  %881 = vmatmul.msk.f32.vlgmr.msrb.gmra.mxu0 %vm382_vm2, %v557_v63 }
 0x253   : > { %884 = vmatmul.msk.f32.vlgmr.msrb.gmra.mxu1 %vm382_vm2, %v557_v63 }
 0x257   : > { %888 = vmatmul.msk.f32.gmra.mxu2 %vm382_vm2, %v558_v15 }
 0x259   : > { %891 = vmatmul.msk.f32.gmra.mxu3 %vm382_vm2, %v558_v15 }
 0x25a   : > { %882 = vmatmul.msk.f32.gmra.mxu0 %vm382_vm2, %v558_v15 }
 0x25b   : > { %885 = vmatmul.msk.f32.gmra.mxu1 %vm382_vm2, %v558_v15 }
 0x25f   : > { %889 = vmatmul.msk.f32.gmra.mxu2 %vm382_vm2, %v559_v19 }
 0x261   : > { %892 = vmatmul.msk.f32.gmra.mxu3 %vm382_vm2, %v559_v19 }
 0x262   : > { %883 = vmatmul.msk.f32.gmra.mxu0 %vm382_vm2, %v559_v19 }
 0x263   : > { %886 = vmatmul.msk.f32.gmra.mxu1 %vm382_vm2, %v559_v19 }
 0x2cf   : > { %v618_v20 = vpop.f32.mrf.mxu0 }
 0x2d0   : > { %v642_v21 = vpop.f32.mrf.mxu1  ;;  %701 = vrot.lane.b32.xlu2 %v618_v20, %s1212_s17 }
 0x2d1   : > { %703 = vrot.lane.b32.xlu0 %v642_v21, %s1212_s17 }
 0x2d2   : > { %v668_v22 = vpop.f32.mrf.mxu2 }
 0x2d3   : > { %705 = vrot.lane.b32.xlu1 %v668_v22, %s1212_s17  ;;  %s1141_s17 = sshra.s32 %s755_s8, 4  ;;  %s1142_s17 = int_to_ptr.hbm [resolvable:$true] %s1141_s17 }
 0x2d4   : > { %v694_v23 = vpop.f32.mrf.mxu3  ;;  %p1148_p12 = scmp.lt.s32.totalorder %s1142_s17, %s1586_s6 }
 0x2d7   : > { %v621_v25 = vpop.f32.mrf.mxu0 }
 0x2d8   : > { %v645_v26 = vpop.f32.mrf.mxu1 }
 0x2da   : > { %v671_v27 = vpop.f32.mrf.mxu2 }
 0x2dc   : > { %v696_v28 = vpop.f32.mrf.mxu3 }
 0x2df   : > { %v623_v29 = vpop.f32.mrf.mxu0 }
 0x2e0   : > { %v648_v30 = vpop.f32.mrf.mxu1 }
 0x2e1   : > { %711 = vrot.lane.b32.xlu2 %v648_v30, %s1213_s19 }
 0x2e2   : > { %v674_v31 = vpop.f32.mrf.mxu2 }
 0x2e3   : > { %713 = vrot.lane.b32.xlu0 %v674_v31, %s1213_s19 }
 0x2e4   : > { %v698_v32 = vpop.f32.mrf.mxu3 }
 0x2e5   : > { %715 = vrot.lane.b32.xlu1 %v698_v32, %s1213_s19  ;;  %s1143_s19 = scalar_lea.hbm %s1142_s17, 8 }
 0x2e6   : > { %p1144_p1 = scmp.ne.s32.totalorder %s1142_s17, %s1143_s19  ;;  %p1149_p8 = scmp.lt.s32.totalorder %s1147_s30, %s1143_s19 }
 0x2e8   : > { %p1145_p3 = pnand %p1144_p1, %p1325_p13  ;;  %p1150_p7 = por %p1149_p8, %p1148_p12 }
 0x2ea   : > { %p1146_p5 = pneg %p1145_p3 }
 0x2eb   : > { %724 = vperm.xlu0 %1006, %v721_v33  }
 0x2ec   : > { %p1151_p9 = pnand %p1150_p7, %p1146_p5 }
 0x32a   : > { %v702_v35 = vpop.permute.xlu2 %701 }
 0x33b   : > { %v712_v38 = vpop.permute.xlu2 %711 }
 0x343   : > { %v704_v34 = vpop.permute.xlu0 %703 }
 0x344   : > { %v708_v39 = vsel %vm504_vm3, %v702_v35, %v704_v34 }
 0x345   : > { %v706_v36 = vpop.permute.xlu1 %705  ;;  %v709_v44 = vadd.f32 %v708_v39, %v645_v26 }
 0x346   : > { %v707_v40 = vsel %vm504_vm3, %v704_v34, %v706_v36 }
 0x347   : > { %v710_v45 = vadd.f32 %v707_v40, %v671_v27 }
 0x355   : > { %v714_v37 = vpop.permute.xlu0 %713 }
 0x356   : > { %v718_v42 = vsel %vm521_vm4, %v712_v38, %v714_v37 }
 0x357   : > { %v716_v41 = vpop.permute.xlu1 %715  ;;  %v719_v47 = vadd.f32 %v718_v42, %v709_v44 }
 0x358   : > { %v717_v43 = vsel %vm521_vm4, %v714_v37, %v716_v41 }
 0x359   : > { %v720_v46 = vadd.f32 %v717_v43, %v710_v45 }
 0x35d   : > { %v725_v48 = vpop.permute.xlu0 %724 }
 0x35e   : > { %v727_v49 = vadd.f32 %v725_v48, %v719_v47  ;;  %v728_v50 = vadd.f32 %v725_v48, %v720_v46 }
 0x360   : > { %v730_v51 = vadd.f32 %v728_v50, %v1374_v1  ;;  %v729_v24 = vadd.f32 %v727_v49, %v1380_v5 }
 0x362   : > { %v733_v52 = vrot.slane %v730_v51, 4 }
 0x364   : > { %v735_v53 = vsel %vm734_vm5, %v729_v24, %v733_v52 }
 0x365   : > { %737 = vst [vmem:[%s317_s14] sm:$0xff] %v735_v53 }
 0x366   : > { %1154 = shalt.err (!%p1151_p9)
}
 0x367   : > { %914 = dma.vmem_to_hbm [thread:$0]  (%p1325_p13), %s753_s29, 128, %s755_s8, %s739_s28  }
 0x368 PF: > { %s766_s10 = sand.u32 1, %s1189_s21   ;;  %p1593_p10 = scmp.ge.s32.totalorder %s1201_s24, 2 }
 0x369   : > { %s767_s15 = scalar_lea.sflag [#allocation4], %s766_s10 }
 0x36a   : > { %p931_p11 = pnand %p1593_p10, %p1330_p4 }
 0x36c   : > { %p932_p0 = pneg %p931_p11 }
 0x36e   : > { %1184 = dma.done.wait (%p932_p0), %s767_s15, 128  }
 0x36f   : > { %1186 = vsyncadd (%p932_p0), %s767_s15, 4294967168  ;;  %p21_p2 = scmp.ge.s32.totalorder %s1305_s26, 4   ;;  %s1594_s21 = smov %s1193_s22 }
 0x370   : > { %s1595_s22 = smov %s1197_s23  ;;  %s1596_s23 = smov %s1317_s7 }
 0x371   : > { %s1597_s24 = smov %s1305_s26  ;;  %23 = sbr.rel (!%p21_p2) target bundleno = 7 (0x7), region = 103 }
 0x376   :  { %773 = vsyncpa [#allocation3], 1 }
 0x377   :  { %775 = vsyncpa [#allocation3 + $0x1], 1 }
 0x378   :  { %776 = vsyncpa [#allocation6], 1 }
 0x379   :  { %777 = vsyncpa [#allocation9], 1 }
 0x37a   :  { %778 = vsyncpa [#allocation4], 1 }
 0x37b   :  { %780 = vsyncpa [#allocation4 + $0x1], 1 }

</bundles_post_ra>
